<compile_context>
chip_gen: v7x
topology: tpu7x:2x2x1
jax: 0.10.0
libtpu: 0.0.40
codegen_flags: <defaults>
</compile_context>

<pallas_src>
import jax
import jax.numpy as jnp
from jax.experimental import pallas as pl
from jax.experimental.pallas import tpu as pltpu


def _round_up(a, b):
    return (a + b - 1) // b * b


# --------------------------- kernels -----------------------------------------
def _conv1x1_kernel_single_k(x_ref, w_ref, shift_ref, o_ref):
    # x_ref:     (C_in, tile_hw)   activation slab (channels x pixels)
    # w_ref:     (C_out, C_in)     BN-scale-folded weights
    # shift_ref: (C_out, 1)        folded bias+BN shift (f32)
    # o_ref:     (C_out, tile_hw)  output slab (lane-dense)
    y = jnp.dot(w_ref[...], x_ref[...], preferred_element_type=jnp.float32)
    y = y + shift_ref[...]
    o_ref[...] = jnp.maximum(y, 0.0).astype(o_ref.dtype)


def _conv1x1_kernel_k_tiled(x_ref, w_ref, shift_ref, o_ref, acc_ref):
    # Same as above but with input-channel (K) tiling and an f32 accumulator.
    k = pl.program_id(2)

    @pl.when(k == 0)
    def _init():
        acc_ref[...] = jnp.zeros_like(acc_ref)

    acc_ref[...] += jnp.dot(w_ref[...], x_ref[...],
                            preferred_element_type=jnp.float32)

    @pl.when(k == pl.num_programs(2) - 1)
    def _finalize():
        y = acc_ref[...] + shift_ref[...]
        o_ref[...] = jnp.maximum(y, 0.0).astype(o_ref.dtype)


# --------------------------- wrapper ------------------------------------------
def conv1x1_bn_relu(x_nchw, weight, bias, gamma, beta, running_mean, running_var,
                    eps=1e-5, compute_dtype=None, tile_hw=None,
                    max_tile_k=512, vmem_budget_bytes=16 * 1024 * 1024):
    """1x1 Conv2d + eval-mode BatchNorm2d + ReLU.

    x_nchw: (N, C_in, H, W); weight: (C_out, C_in, 1, 1); bias: (C_out,).
    compute_dtype: optional (e.g. jnp.bfloat16) dtype for x / folded weights;
    accumulation, shift and ReLU stay in f32. Output keeps x's dtype.
    """
    N, C_in, H, W = x_nchw.shape
    C_out = weight.shape[0]
    HW = H * W
    out_dtype = x_nchw.dtype
    if compute_dtype is None:
        compute_dtype = x_nchw.dtype

    # ---- Fold conv bias + BN (eval mode) into the weights + one shift --------
    #   y = gamma*(W@x + b - mean)/sqrt(var+eps) + beta
    #     = (scale*W) @ x + (scale*(b - mean) + beta)
    inv_std = 1.0 / jnp.sqrt(running_var.astype(jnp.float32) + eps)
    scale = gamma.astype(jnp.float32) * inv_std                           # (C_out,)
    shift = (bias.astype(jnp.float32) - running_mean.astype(jnp.float32)) * scale \
            + beta.astype(jnp.float32)                                    # (C_out,)
    w2d = (weight.reshape(C_out, C_in).astype(jnp.float32)
           * scale[:, None]).astype(compute_dtype)                        # (C_out, C_in)
    shift2d = shift[:, None]                                              # (C_out, 1) f32

    # ---- NCHW-native reshape (free; no transposes) ---------------------------
    x3 = x_nchw.reshape(N, C_in, HW).astype(compute_dtype)                # (N, C_in, HW)

    # ---- K (input-channel) tiling for large C_in ------------------------------
    if C_in <= max_tile_k:
        tile_k = C_in
        c_in_pad = C_in
    else:
        # tile_k must be a multiple of 128 (weight lane dim / x sublane dim).
        tile_k = max(128, max_tile_k // 128 * 128)
        c_in_pad = _round_up(C_in, tile_k)
    if c_in_pad > C_in:
        x3 = jnp.pad(x3, ((0, 0), (0, c_in_pad - C_in), (0, 0)))
        w2d = jnp.pad(w2d, ((0, 0), (0, c_in_pad - C_in)))
    num_k = c_in_pad // tile_k

    # ---- Pick a lane-dense HW tile from the VMEM budget -----------------------
    in_bytes = jnp.dtype(compute_dtype).itemsize
    out_bytes = jnp.dtype(out_dtype).itemsize
    if tile_hw is None:
        per_lane = 2 * tile_k * in_bytes + 2 * C_out * out_bytes          # dbl-buf x + out
        if num_k > 1:
            per_lane += 4 * C_out                                         # f32 accumulator
        w_resident = 2 * C_out * tile_k * in_bytes                        # dbl-buf weights
        budget = max(vmem_budget_bytes - w_resident, 1 << 20)
        max_lanes = max(128, (budget // per_lane) // 128 * 128)
        tile_hw = max(128, min(2048, _round_up(HW, 128), max_lanes))
    hw_pad = _round_up(HW, tile_hw)
    if hw_pad > HW:
        x3 = jnp.pad(x3, ((0, 0), (0, 0), (0, hw_pad - HW)))
    num_t = hw_pad // tile_hw

    out_shape = jax.ShapeDtypeStruct((N, C_out, hw_pad), out_dtype)

    if num_k == 1:
        # Common case: no accumulator scratch, fully parallel 2-D grid.
        kernel = _conv1x1_kernel_single_k
        grid_spec = pltpu.PrefetchScalarGridSpec(
            num_scalar_prefetch=0,
            grid=(N, num_t),
            in_specs=[
                pl.BlockSpec((None, tile_k, tile_hw), lambda n, t: (n, 0, t)),
                pl.BlockSpec((C_out, tile_k), lambda n, t: (0, 0)),
                pl.BlockSpec((C_out, 1), lambda n, t: (0, 0)),
            ],
            out_specs=pl.BlockSpec((None, C_out, tile_hw), lambda n, t: (n, 0, t)),
        )
        dims = ("parallel", "parallel")
    else:
        kernel = _conv1x1_kernel_k_tiled
        grid_spec = pltpu.PrefetchScalarGridSpec(
            num_scalar_prefetch=0,
            grid=(N, num_t, num_k),
            in_specs=[
                pl.BlockSpec((None, tile_k, tile_hw), lambda n, t, k: (n, k, t)),
                pl.BlockSpec((C_out, tile_k), lambda n, t, k: (0, k)),
                pl.BlockSpec((C_out, 1), lambda n, t, k: (0, 0)),
            ],
            out_specs=pl.BlockSpec((None, C_out, tile_hw), lambda n, t, k: (n, 0, t)),
            scratch_shapes=[pltpu.VMEM((C_out, tile_hw), jnp.float32)],
        )
        dims = ("parallel", "parallel", "arbitrary")

    out3 = pl.pallas_call(
        kernel,
        out_shape=out_shape,
        grid_spec=grid_spec,
        compiler_params=pltpu.CompilerParams(
            dimension_semantics=dims,
            # Headroom above the tile budget; stays below v7x's 64 MiB physical VMEM.
            vmem_limit_bytes=48 * 1024 * 1024,
        ),
    )(x3, w2d, shift2d)

    # Strip HW padding and restore NCHW (reshape only, no transpose).
    return out3[:, :, :HW].reshape(N, C_out, H, W)


def reference(x_nchw, weight, bias, gamma, beta, running_mean, running_var, eps=1e-5):
    # Pure-JAX reference for the same (eval-mode) semantics.
    C_out, C_in = weight.shape[0], weight.shape[1]
    y = jnp.einsum("nchw,oc->nohw", x_nchw, weight.reshape(C_out, C_in))
    y = y + bias[None, :, None, None]
    y = (y - running_mean[None, :, None, None]) / jnp.sqrt(
        running_var[None, :, None, None] + eps)
    y = y * gamma[None, :, None, None] + beta[None, :, None, None]
    return jnp.maximum(y, 0.0)


def _make_params(key, C_out, C_in):
    k2, k3, k4, k5, k6, k7 = jax.random.split(key, 6)
    weight = jax.random.normal(k2, (C_out, C_in, 1, 1), dtype=jnp.float32) * 0.1
    bias = jax.random.normal(k3, (C_out,), dtype=jnp.float32) * 0.1
    gamma = 1.0 + 0.1 * jax.random.normal(k4, (C_out,), dtype=jnp.float32)
    beta = 0.1 * jax.random.normal(k5, (C_out,), dtype=jnp.float32)
    running_mean = 0.1 * jax.random.normal(k6, (C_out,), dtype=jnp.float32)
    running_var = jnp.abs(1.0 + 0.1 * jax.random.normal(k7, (C_out,), dtype=jnp.float32))
    return weight, bias, gamma, beta, running_mean, running_var


if __name__ == "__main__":
    key = jax.random.PRNGKey(0)
    kx, kp, kx2, kp2 = jax.random.split(key, 4)

    # ---- Case 1: small shapes (single-K fast path), f32 and bf16 -------------
    N, C_in, H, W = 2, 4, 16, 16
    C_out = 8  # planes
    x = jax.random.normal(kx, (N, C_in, H, W), dtype=jnp.float32)
    weight, bias, gamma, beta, rmean, rvar = _make_params(kp, C_out, C_in)

    ref = reference(x, weight, bias, gamma, beta, rmean, rvar)

    out = conv1x1_bn_relu(x, weight, bias, gamma, beta, rmean, rvar)
    out = jax.block_until_ready(out)
    assert out.shape == (N, C_out, H, W)
    assert jnp.allclose(out, ref, atol=1e-5, rtol=1e-5), "f32 mismatch vs reference"

    out_bf16 = conv1x1_bn_relu(x, weight, bias, gamma, beta, rmean, rvar,
                               compute_dtype=jnp.bfloat16)
    out_bf16 = jax.block_until_ready(out_bf16)
    assert jnp.allclose(out_bf16, ref, atol=3e-2, rtol=3e-2), "bf16 mismatch vs reference"

    # ---- Case 2: larger C_in exercises the K-tiled accumulator path ----------
    N2, C_in2, H2, W2 = 1, 256, 8, 8
    C_out2 = 8
    x2 = jax.random.normal(kx2, (N2, C_in2, H2, W2), dtype=jnp.float32)
    weight2, bias2, gamma2, beta2, rmean2, rvar2 = _make_params(kp2, C_out2, C_in2)

    ref2 = reference(x2, weight2, bias2, gamma2, beta2, rmean2, rvar2)
    out2 = conv1x1_bn_relu(x2, weight2, bias2, gamma2, beta2, rmean2, rvar2,
                           max_tile_k=128)  # force K tiling (num_k = 2)
    out2 = jax.block_until_ready(out2)
    assert out2.shape == (N2, C_out2, H2, W2)
    assert jnp.allclose(out2, ref2, atol=1e-4, rtol=1e-4), "K-tiled mismatch vs reference"

    print("KERNEL_OK")
</pallas_src>

<mosaic_0001>
module attributes {stable_mosaic.version = 11 : i64} {
  func.func @_conv1x1_kernel_single_k(%arg0: i32, %arg1: i32, %arg2: memref<1x4x256xf32, #tpu.memory_space<vmem>>, %arg3: memref<8x4xf32, #tpu.memory_space<vmem>>, %arg4: memref<8x1xf32, #tpu.memory_space<vmem>>, %arg5: memref<1x8x256xf32, #tpu.memory_space<vmem>>) attributes {dimension_semantics = [#tpu.dimension_semantics<parallel>, #tpu.dimension_semantics<parallel>], iteration_bounds = array<i64: 2, 1>, scalar_prefetch = 0 : i64, scratch_operands = 0 : i64, tpu.core_type = #tpu.core_type<tc>, window_params = [{transform_indices = @transform_0, window_bounds = array<i64: 1, 4, 256>}, {pipeline_mode = #tpu.pipeline_mode<synchronous>, transform_indices = @transform_1, window_bounds = array<i64: 8, 4>}, {pipeline_mode = #tpu.pipeline_mode<synchronous>, transform_indices = @transform_2, window_bounds = array<i64: 8, 1>}, {transform_indices = @transform_3, window_bounds = array<i64: 1, 8, 256>}]} {
    %c0 = arith.constant 0 : index
    %c0_0 = arith.constant 0 : index
    %0 = vector.load %arg3[%c0, %c0_0] : memref<8x4xf32, #tpu.memory_space<vmem>>, vector<8x4xf32>
    %c0_1 = arith.constant 0 : index
    %c0_2 = arith.constant 0 : index
    %c0_3 = arith.constant 0 : index
    %1 = vector.load %arg2[%c0_1, %c0_2, %c0_3] : memref<1x4x256xf32, #tpu.memory_space<vmem>>, vector<1x4x256xf32>
    %2 = vector.shape_cast %1 : vector<1x4x256xf32> to vector<4x256xf32>
    %cst = arith.constant dense<0.000000e+00> : vector<8x256xf32>
    %3 = tpu.matmul %0, %2, %cst {dimension_numbers = #tpu.dot_dimension_numbers<[1], [0], [0], [1], [0, 0, 1, 1], [], []>} : vector<8x4xf32>, vector<4x256xf32>, vector<8x256xf32> -> vector<8x256xf32>
    %c0_4 = arith.constant 0 : index
    %c0_5 = arith.constant 0 : index
    %4 = vector.load %arg4[%c0_4, %c0_5] : memref<8x1xf32, #tpu.memory_space<vmem>>, vector<8x1xf32>
    %5 = vector.broadcast %4 : vector<8x1xf32> to vector<8x256xf32>
    %6 = arith.addf %3, %5 : vector<8x256xf32>
    %cst_6 = arith.constant 0.000000e+00 : f32
    %7 = vector.broadcast %cst_6 : f32 to vector<8x256xf32>
    %8 = arith.maximumf %6, %7 : vector<8x256xf32>
    %c0_7 = arith.constant 0 : index
    %c0_8 = arith.constant 0 : index
    %c0_9 = arith.constant 0 : index
    %9 = vector.load %arg5[%c0_7, %c0_8, %c0_9] : memref<1x8x256xf32, #tpu.memory_space<vmem>>, vector<1x8x256xf32>
    %10 = vector.shape_cast %9 : vector<1x8x256xf32> to vector<8x256xf32>
    %11 = vector.shape_cast %8 : vector<8x256xf32> to vector<1x8x256xf32>
    tpu.vector_store %arg5[%c0_7, %c0_8, %c0_9], %11 {strides = array<i32>} : memref<1x8x256xf32, #tpu.memory_space<vmem>>, vector<1x8x256xf32>,
    return
  }
  func.func @transform_0(%arg0: i32, %arg1: i32) -> (i32, i32, i32) {
    %c0_i32 = arith.constant 0 : i32
    %c0_i32_0 = arith.constant 0 : i32
    return %arg0, %c0_i32, %arg1 : i32, i32, i32
  }
  func.func @transform_1(%arg0: i32, %arg1: i32) -> (i32, i32) {
    %c0_i32 = arith.constant 0 : i32
    %c0_i32_0 = arith.constant 0 : i32
    %c0_i32_1 = arith.constant 0 : i32
    return %c0_i32, %c0_i32_0 : i32, i32
  }
  func.func @transform_2(%arg0: i32, %arg1: i32) -> (i32, i32) {
    %c0_i32 = arith.constant 0 : i32
    %c0_i32_0 = arith.constant 0 : i32
    %c0_i32_1 = arith.constant 0 : i32
    return %c0_i32, %c0_i32_0 : i32, i32
  }
  func.func @transform_3(%arg0: i32, %arg1: i32) -> (i32, i32, i32) {
    %c0_i32 = arith.constant 0 : i32
    %c0_i32_0 = arith.constant 0 : i32
    return %arg0, %c0_i32, %arg1 : i32, i32, i32
  }
}

</mosaic_0001>

<bundles_post_ra>
// kernel: tpu_custom_call.1
= control target key start
LH: loop header
LB: loop body
LE: loop exit
PB: predicated region body
PF: predicated region fallthrough
CT: control target
= control target key end

     0   :  { %8 = vsyncpa [#allocation3], 0  ;;  %s685_s0 = inlined_call_operand.vmem [shape: f32[2,4,256], index: 0, kind: input, shape index: {}]   ;;  %s686_s1 = inlined_call_operand.vmem [shape: f32[8,4], index: 1, kind: input, shape index: {}]   ;;  %s687_s2 = inlined_call_operand.vmem [shape: f32[8,1], index: 2, kind: input, shape index: {}]   ;;  %s688_s3 = inlined_call_operand.hbm [shape: f32[2,8,256], index: 3, kind: output, shape index: {}]  }
   0x1   :  { %10 = vsyncpa [#allocation3 + $0x1], 0  ;;  %s567_s12 = smov 0   ;;  %s569_s13 = smov 0  }
   0x2   :  { %s571_s14 = smov 0   ;;  %s573_s15 = smov 0  }
   0x3   :  { %s575_s16 = smov 0   ;;  %s577_s17 = smov 0  }
   0x4 LB: > { %s387_s18 = sadd.s32 4294967295, %s542_s17   ;;  %s388_s19 = sadd.s32 4294967294, %s542_s17   ;;  %s542_s17 = sphi %s577_s17, %s16_s17   ;;  %s538_s16 = sphi %s575_s16, %s695_s16   ;;  %s534_s15 = sphi %s573_s15, %s694_s15   ;;  %s530_s14 = sphi %s571_s14, %s693_s14   ;;  %s526_s13 = sphi %s569_s13, %s692_s13   ;;  %s522_s12 = sphi %s567_s12, %s691_s12  }
   0x5   : > { %s28_s20 = sadd.s32 1, %s538_s16  ;;  %s107_s21 = sadd.s32 1, %s530_s14 }
   0x6   : > { %p30_p0 = scmp.ge.s32.totalorder %s28_s20, 2  ;;  %p117_p1 = scmp.ne.s32.totalorder %s530_s14, %s526_s13 }
   0x7   : > { %p118_p2 = scmp.eq.s32.totalorder %s387_s18, 1  ;;  %p123_p3 = scmp.ne.s32.totalorder %s526_s13, %s522_s12 }
   0x8   : > { %s697_s20 = smov (%p30_p0, %s28_s20), 0  ;;  %p124_p5 = scmp.eq.s32.totalorder %s388_s19, 1 }
   0x9   : > { %p607_p4 = por %p118_p2, %p117_p1  ;;  %s102_s23 = ssub.s32 %s538_s16, %s697_s20 }
   0xa   : > { %p391_p6 = scmp.ge.s32.totalorder %s542_s17, 1  ;;  %p105_p7 = scmp.eq.s32.totalorder %s102_s23, 0 }
   0xb   : > { %p614_p8 = por %p124_p5, %p123_p3  ;;  %p161_p9 = scmp.lt.s32.totalorder %s542_s17, 3 }
   0xc   : > { %s620_s25 = scalar_select %p105_p7, %s530_s14, %s107_s21  }
   0xd   : > { %p162_p10 = pnand %p391_p6, %p161_p9 }
   0xe   : > { %p190_p11 = scmp.lt.s32.totalorder (!%p162_p10), %s534_s15, 1  ;;  %v544_v0 = vmov (!%p162_p10), 0.0   ;;  %v545_v1 = vmov (!%p162_p10), 0   ;;  %v202_v2 = vld [vmem:[%s687_s2] sm:$0xff] (!%p162_p10)  ;;  %vm214_vm0 = vcmask (!%p162_p10), 1043456   ;;  %vm210_vm1 = vcmask (!%p162_p10), 31744  }
   0xf   : > { %165 = sbr.rel (%p162_p10) target bundleno = 262 (0x106), region = 32  ;;  %283 = vmatprep.mubr.f32.mxu0 (!%p162_p10), %v544_v0  ;;  %462 = vset.pattern.permute.xlu0 (!%p162_p10), %v545_v1  ;;  %v200_v5 = vld [vmem:[%s686_s1] sm:$0xff] (!%p162_p10)  ;;  %s186_s8 = sand.u32 (!%p162_p10), 1, %s526_s13  }
  0x10   : > { %205 = vperm.xlu0 (!%p162_p10), %462, %v202_v2   ;;  %s392_s9 = sshll.u32 (!%p162_p10), %s186_s8, 4  ;;  %s404_s10 = sshll.u32 (!%p162_p10), %s534_s15, 8 }
  0x11   : > { %s188_s11 = scalar_lea.vmem (!%p162_p10), [#allocation2], %s392_s9  ;;  %s638_s23 = scalar_lea.hbm (!%p162_p10), %s688_s3, %s404_s10 }
  0x12   : > { %s311_s18 = sshll.u32 (!%p162_p10), %s188_s11, 4  ;;  %s295_s26 = scalar_lea.sflag (!%p162_p10), [#allocation3], %s186_s8  ;;  %s640_s18 = int_to_ptr.vmem [resolvable:$true] %s311_s18 }
  0x13   : > { %s464_s27 = scalar_lea.vmem (!%p162_p10), %s640_s18, 256 }
  0x14   : > { %p465_p12 = scmp.ne.s32.totalorder (!%p162_p10), %s640_s18, %s464_s27 }
  0x16   : > { %s191_s28 = scalar_select %p190_p11, %s534_s15, 1 }
  0x17   : > { %p466_p13 = pnand %p465_p12, %p607_p4  ;;  %s546_s15 = smov [#allocation2]  }
  0x18   : > { %s403_s29 = sshll.u32 %s191_s28, 3  ;;  %s468_s28 = sshll.u32 %s546_s15, 4  ;;  %s469_s28 = int_to_ptr.vmem [resolvable:$false] %s468_s28 }
  0x19   : > { %s197_s5 = scalar_lea.vmem %s685_s0, %s403_s29  ;;  %p467_p0 = pneg %p466_p13 }
  0x1a   : > { %v201_v3 = vld [vmem:[%s197_s5] sm:$0xff]  ;;  %s470_s29 = scalar_lea.vmem %s469_s28, 512  ;;  %p471_p1 = scmp.lt.s32.totalorder %s640_s18, %s469_s28 }
  0x1b   : > { %v209_v4 = vcombine.high %v201_v3, %v201_v3  ;;  %p472_p2 = scmp.lt.s32.totalorder %s470_s29, %s464_s27 }
  0x1d   : > { %395 = vmatprep.subr.msk.mxu0 %vm214_vm0, %v209_v4  ;;  %p473_p3 = por %p472_p2, %p471_p1 }
  0x1e   : > { %396 = vmatpush1.msk.msra.mxu0 %vm214_vm0, %v201_v3 }
  0x1f   : > { %397 = vmatmul.mubr.msk.f32.vlgmr.msra.gmra.mrb[0].mxu0 %vm210_vm1, %v200_v5  ;;  %p474_p5 = pnand %p473_p3, %p467_p0 }
  0x8f   : > { %v206_v6 = vpop.permute.xlu0 %205 }
  0xf2   : > { %v285_v7 = vpop.f32.mrb[0].mxu0 }
  0xf3   : > { %v286_v8 = vadd.f32 %v285_v7, %v206_v6  ;;  %v287_v9 = vpop.f32.mrb[1].mxu0 }
  0xf4   : > { %v288_v10 = vadd.f32 %v287_v9, %v206_v6 }
  0xf5   : > { %v290_v11 = vmax.f32 %v286_v8, 0.0 }
  0xf6   : > { %v291_v12 = vmax.f32 %v288_v10, 0.0 }
  0xf7   : > { %292 = vst [vmem:[%s188_s11] sm:$0xff] %v290_v11 }
  0xf8   : > { %293 = vst [vmem:[%s188_s11 + $0x8] sm:$0xff] %v291_v12 }
  0xf9   : > { %477 = shalt.err (!%p474_p5)
}
  0xfa   : > { %s478_s30 = scalar_lea.hbm %s638_s23, 256  ;;  %s482_s6 = scalar_lea.hbm %s688_s3, 512 }
  0xfb   : > { %p479_p6 = scmp.ne.s32.totalorder %s638_s23, %s478_s30  ;;  %p483_p10 = scmp.lt.u32.totalorder %s638_s23, %s688_s3 }
  0xfc   : > { %p484_p11 = scmp.lt.u32.totalorder %s482_s6, %s478_s30  ;;  %p486_p13 = scmp.lt.u32.totalorder %s478_s30, %s638_s23 }
  0xfd   : > { %p480_p7 = pnand %p479_p6, %p607_p4 }
  0xfe   : > { %p485_p12 = por %p484_p11, %p483_p10 }
  0xff   : > { %p481_p9 = pneg %p480_p7 }
 0x100   : > { %p487_p0 = por %p486_p13, %p485_p12 }
 0x102   : > { %p488_p1 = pnand %p487_p0, %p481_p9 }
 0x104   : > { %491 = shalt.err (!%p488_p1)
}
 0x105   : > { %405 = dma.vmem_to_hbm [thread:$0]  (%p607_p4), %s640_s18, 256, %s638_s23, %s295_s26  }
 0x106 PF: > { %p411_p2 = scmp.ge.s32.totalorder %s542_s17, 2  ;;  %s323_s9 = sand.u32 1, %s522_s12  }
 0x107   : > { %s324_s10 = scalar_lea.sflag [#allocation3], %s323_s9 }
 0x108   : > { %p408_p3 = pnand %p411_p2, %p614_p8 }
 0x10a   : > { %517 = dma.done.wait (!%p408_p3), %s324_s10, 256  }
 0x10b   : > { %519 = vsyncadd (!%p408_p3), %s324_s10, 4294967040  ;;  %s16_s17 = sadd.s32 1, %s542_s17   ;;  %s691_s12 = smov %s526_s13 }
 0x10c   : > { %p13_p5 = scmp.ge.s32.totalorder %s16_s17, 4   ;;  %s692_s13 = smov %s530_s14 }
 0x10d   : > { %s693_s14 = smov %s620_s25  ;;  %s694_s15 = smov %s538_s16 }
 0x10e   : > { %s695_s16 = smov %s697_s20  ;;  %15 = sbr.rel (!%p13_p5) target bundleno = 4 (0x4), region = 67 }
 0x115   :  { %329 = vsyncpa [#allocation3], 1 }
 0x116   :  { %331 = vsyncpa [#allocation3 + $0x1], 1 }

</bundles_post_ra>
